<compile_context>
chip_gen: v7x
topology: tpu7x:2x2x1
jax: 0.10.0
libtpu: 0.0.40
codegen_flags: <defaults>
</compile_context>

<pallas_src>
import jax
import jax.numpy as jnp
import numpy as np
from jax.experimental import pallas as pl
from jax.experimental.pallas import tpu as pltpu  # noqa: F401  (not needed: no grid/scratch)

# ---- static model configuration (small shapes consistent with EEGNet.__init__) ----
B    = 2               # batch
C    = 8               # EEG channels
T    = 64              # timepoints (divisible by 32)
KL   = 8               # kernel_length of block1 temporal conv
F1   = 4               # block1 filters
D    = 2               # depth multiplier
F2   = F1 * D          # = 8
KL3  = 16              # separable conv temporal kernel, fixed (1,16) in the module
T4   = T // 4          # 16
T32  = T // 32         # 2
PADL1 = (KL - 1) // 2
PADR1 = (KL - 1) - PADL1
PADL3 = (KL3 - 1) // 2         # = 7 (right pad is 8)
WPAD  = B * T4 + KL3           # 48 padded pooled lanes (7 zeros | b0 data | b1 data | zeros)
EPS   = 0.0                    # nn.BatchNorm2d(f, False) -> eps == 0.0
HIGH  = jax.lax.Precision.HIGHEST


def _eegnet_kernel(xcol_ref, w1f_ref, s2_ref, o2_ref, p4_ref, wm_ref,
                   wpt_ref, o3_ref, wc0_ref, wc1_ref, seg_ref, bd_ref, out_ref):
    # block1 temporal conv + BN1 + block2 depthwise over EEG channels:
    # one im2col matmul (8, 64) @ (64, 128) -> (F2, B*T)
    h2 = jnp.dot(w1f_ref[...], xcol_ref[...], preferred_element_type=jnp.float32)

    # BN2 (block1/BN1 constant term folded into the offset) + ELU
    h2 = h2 * s2_ref[...] + o2_ref[...]
    h2 = jnp.where(h2 > 0, h2, jnp.exp(jnp.minimum(h2, 0.0)) - 1.0)

    # AvgPool(1,4) + zero padding for the (1,16) separable conv as one matmul:
    # (8, 128) @ (128, 48) -> padded pooled slab (batch blocks at lanes 7..22 / 23..38)
    h2p = jnp.dot(h2, p4_ref[...], preferred_element_type=jnp.float32)

    # separable depthwise (1,16) temporal conv: 16 static-slice multiply-adds
    # on the VPU with masked per-tap weights (mask kills cross-batch / OOB taps)
    h4 = jnp.zeros((F2, B * T4), jnp.float32)
    for k in range(KL3):
        h4 = h4 + wm_ref[k] * h2p[:, k:k + B * T4]

    # pointwise 1x1 conv (BN3 scale folded into the weights) + BN3 offset + ELU
    h5 = jnp.dot(wpt_ref[...], h4, preferred_element_type=jnp.float32) + o3_ref[...]
    h5 = jnp.where(h5 > 0, h5, jnp.exp(jnp.minimum(h5, 0.0)) - 1.0)

    # AvgPool(1,8) + dense folded into per-class lane weights; per-batch block
    # sums via one tiny (8,32)@(32,2) matmul per class, then a sublane reduce.
    m0 = jnp.dot(h5 * wc0_ref[...], seg_ref[...], preferred_element_type=jnp.float32)  # (F2, B)
    m1 = jnp.dot(h5 * wc1_ref[...], seg_ref[...], preferred_element_type=jnp.float32)  # (F2, B)
    out_ref[0:1, :] = jnp.sum(m0, axis=0, keepdims=True) + bd_ref[0:1, :]
    out_ref[1:2, :] = jnp.sum(m1, axis=0, keepdims=True) + bd_ref[1:2, :]


def eegnet_forward(x, p):
    x = x.astype(jnp.float32)

    # ---- eval-mode BatchNorm folding into scale/offset (parameter preprocessing) ----
    s1 = p["bn1_g"] / jnp.sqrt(p["bn1_v"] + EPS)
    o1 = p["bn1_b"] - p["bn1_m"] * s1
    s2 = p["bn2_g"] / jnp.sqrt(p["bn2_v"] + EPS)
    o2 = p["bn2_b"] - p["bn2_m"] * s2
    s3 = p["bn3_g"] / jnp.sqrt(p["bn3_v"] + EPS)
    o3 = p["bn3_b"] - p["bn3_m"] * s3

    # ---- block1 im2col: batch packed along the lane (time) axis -> (KL*C, B*T) ----
    xp = jnp.pad(x, ((0, 0), (0, 0), (PADL1, PADR1)))               # (B, C, T+KL-1)
    xcol = jnp.stack([xp[:, :, k:k + T] for k in range(KL)], axis=0)  # (KL, B, C, T)
    xcol = xcol.transpose(0, 2, 1, 3).reshape(KL * C, B * T)        # (64, 128)

    # fused: block1 conv weight * BN1 scale * block2 depthwise weight -> (F2, KL*C)
    f_of_j = jnp.arange(F2) // D
    w1f = (s1[f_of_j][:, None, None]
           * p["w1"][f_of_j][:, :, None]
           * p["w_dw"][:, None, :]).reshape(F2, KL * C)
    # BN2 offset with the block1/BN1 constant term folded in
    o2c = o2 + s2 * (o1[f_of_j] * jnp.sum(p["w_dw"], axis=1))

    # ---- AvgPool(1,4) + zero-pad matrix, block-diagonal over the packed batch ----
    rows = jnp.arange(B * T)
    dst = PADL3 + (rows // T) * T4 + (rows % T) // 4
    p4pad = 0.25 * (dst[:, None] == jnp.arange(WPAD)[None, :]).astype(jnp.float32)  # (128, 48)

    # masked per-tap depthwise weights: zero where the tap leaves the T4 window
    u_in_b = jnp.arange(B * T4) % T4
    src = u_in_b[None, :] + jnp.arange(KL3)[:, None] - PADL3
    valid = ((src >= 0) & (src < T4)).astype(jnp.float32)           # (KL3, B*T4)
    wm = p["w_sp"].T[:, :, None] * valid[:, None, :]                # (KL3, F2, B*T4)

    # pointwise 1x1 conv with BN3 scale folded
    wpt3 = s3[:, None] * p["w_pt"]                                  # (F2, F2)

    # AvgPool(1,8) + dense folded into per-class lane weights (channel-major flatten)
    wd3 = p["w_dense"].reshape(2, F2, T32)
    wc = wd3[:, :, (u_in_b // 8)] / 8.0                             # (2, F2, B*T4)
    seg = ((jnp.arange(B * T4)[:, None] // T4) ==
           jnp.arange(B)[None, :]).astype(jnp.float32)              # (B*T4, B)
    bd2 = jnp.broadcast_to(p["b_dense"][:, None], (2, B))           # [class, batch]

    out_cb = pl.pallas_call(
        _eegnet_kernel,
        out_shape=jax.ShapeDtypeStruct((2, B), jnp.float32),        # [class, batch]
    )(xcol, w1f, s2[:, None], o2c[:, None], p4pad, wm, wpt3,
      o3[:, None], wc[0], wc[1], seg, bd2)
    return out_cb.T                                                 # (B, 2)


def eegnet_ref(x, p):
    """Pure-JAX reference mirroring the PyTorch forward (eval mode), HIGHEST precision."""
    xp = jnp.pad(x.astype(jnp.float32), ((0, 0), (0, 0), (PADL1, PADR1)))
    # block1
    h1 = jnp.stack([sum(p["w1"][f, k] * xp[:, :, k:k + T] for k in range(KL))
                    for f in range(F1)], axis=1)                    # (B, F1, C, T)
    s1 = p["bn1_g"] / jnp.sqrt(p["bn1_v"] + EPS)
    o1 = p["bn1_b"] - p["bn1_m"] * s1
    h1 = h1 * s1[None, :, None, None] + o1[None, :, None, None]
    # block2
    h2 = jnp.stack([jnp.einsum("bct,c->bt", h1[:, j // D], p["w_dw"][j], precision=HIGH)
                    for j in range(F2)], axis=1)                    # (B, F2, T)
    s2 = p["bn2_g"] / jnp.sqrt(p["bn2_v"] + EPS)
    o2 = p["bn2_b"] - p["bn2_m"] * s2
    h2 = h2 * s2[None, :, None] + o2[None, :, None]
    h2 = jnp.where(h2 > 0, h2, jnp.exp(jnp.minimum(h2, 0.0)) - 1.0)
    h2 = h2.reshape(B, F2, T4, 4).mean(-1)
    # block3
    h2p = jnp.pad(h2, ((0, 0), (0, 0), (PADL3, KL3 - 1 - PADL3)))
    h4 = sum(p["w_sp"][None, :, k:k + 1] * h2p[:, :, k:k + T4] for k in range(KL3))
    h5 = jnp.einsum("oi,bit->bot", p["w_pt"], h4, precision=HIGH)
    s3 = p["bn3_g"] / jnp.sqrt(p["bn3_v"] + EPS)
    o3 = p["bn3_b"] - p["bn3_m"] * s3
    h5 = h5 * s3[None, :, None] + o3[None, :, None]
    h5 = jnp.where(h5 > 0, h5, jnp.exp(jnp.minimum(h5, 0.0)) - 1.0)
    h6 = h5.reshape(B, F2, T32, 8).mean(-1)
    flat = h6.reshape(B, F2 * T32)
    return jnp.dot(flat, p["w_dense"].T, precision=HIGH) + p["b_dense"]


def init_params(key):
    ks = jax.random.split(key, 10)
    p = {}
    p["w1"] = 0.3 * jax.random.normal(ks[0], (F1, KL), jnp.float32)      # Conv2d(1,F1,(1,KL))
    p["w_dw"] = 0.3 * jax.random.normal(ks[1], (F2, C), jnp.float32)     # DepthwiseConv2d (F2,1,C,1)
    p["w_sp"] = 0.3 * jax.random.normal(ks[2], (F2, KL3), jnp.float32)   # Separable spatial (F2,1,1,16)
    p["w_pt"] = 0.3 * jax.random.normal(ks[3], (F2, F2), jnp.float32)    # Pointwise 1x1
    p["w_dense"] = 0.3 * jax.random.normal(ks[4], (2, F2 * T32), jnp.float32)
    p["b_dense"] = 0.1 * jax.random.normal(ks[5], (2,), jnp.float32)
    for i, (name, n) in enumerate([("bn1", F1), ("bn2", F2), ("bn3", F2)]):
        kg, kb, km, kv = jax.random.split(ks[6 + i], 4)
        p[f"{name}_g"] = 1.0 + 0.1 * jax.random.normal(kg, (n,), jnp.float32)
        p[f"{name}_b"] = 0.1 * jax.random.normal(kb, (n,), jnp.float32)
        p[f"{name}_m"] = 0.1 * jax.random.normal(km, (n,), jnp.float32)
        p[f"{name}_v"] = jax.random.uniform(kv, (n,), jnp.float32, 0.5, 1.5)
    return p


if __name__ == "__main__":
    key = jax.random.PRNGKey(0)
    kp, kx = jax.random.split(key)
    params = init_params(kp)
    x = jax.random.normal(kx, (B, C, T), jnp.float32)   # (batch, eeg_channels, timepoints)

    out = jax.block_until_ready(eegnet_forward(x, params))
    assert out.shape == (B, 2)

    ref = eegnet_ref(x, params)
    # Kernel matmuls run at default (single-pass bf16) MXU precision per the
    # performance review; reference is HIGHEST precision, hence 1e-2 tolerance.
    np.testing.assert_allclose(np.asarray(out), np.asarray(ref), rtol=1e-2, atol=1e-2)
    print("KERNEL_OK")
</pallas_src>

<mosaic_0001>
module attributes {stable_mosaic.version = 11 : i64} {
  func.func @_eegnet_kernel(%arg0: memref<64x128xf32, #tpu.memory_space<vmem>>, %arg1: memref<8x64xf32, #tpu.memory_space<vmem>>, %arg2: memref<8x1xf32, #tpu.memory_space<vmem>>, %arg3: memref<8x1xf32, #tpu.memory_space<vmem>>, %arg4: memref<128x48xf32, #tpu.memory_space<vmem>>, %arg5: memref<16x8x32xf32, #tpu.memory_space<vmem>>, %arg6: memref<8x8xf32, #tpu.memory_space<vmem>>, %arg7: memref<8x1xf32, #tpu.memory_space<vmem>>, %arg8: memref<8x32xf32, #tpu.memory_space<vmem>>, %arg9: memref<8x32xf32, #tpu.memory_space<vmem>>, %arg10: memref<32x2xf32, #tpu.memory_space<vmem>>, %arg11: memref<2x2xf32, #tpu.memory_space<vmem>>, %arg12: memref<2x2xf32, #tpu.memory_space<vmem>>) attributes {dimension_semantics = [], scalar_prefetch = 0 : i64, scratch_operands = 0 : i64, tpu.core_type = #tpu.core_type<tc>} {
    %c0 = arith.constant 0 : index
    %c0_0 = arith.constant 0 : index
    %0 = vector.load %arg1[%c0, %c0_0] : memref<8x64xf32, #tpu.memory_space<vmem>>, vector<8x64xf32>
    %c0_1 = arith.constant 0 : index
    %c0_2 = arith.constant 0 : index
    %1 = vector.load %arg0[%c0_1, %c0_2] : memref<64x128xf32, #tpu.memory_space<vmem>>, vector<64x128xf32>
    %cst = arith.constant dense<0.000000e+00> : vector<8x128xf32>
    %2 = tpu.matmul %0, %1, %cst {dimension_numbers = #tpu.dot_dimension_numbers<[1], [0], [0], [1], [0, 0, 1, 1], [], []>} : vector<8x64xf32>, vector<64x128xf32>, vector<8x128xf32> -> vector<8x128xf32>
    %c0_3 = arith.constant 0 : index
    %c0_4 = arith.constant 0 : index
    %3 = vector.load %arg2[%c0_3, %c0_4] : memref<8x1xf32, #tpu.memory_space<vmem>>, vector<8x1xf32>
    %4 = vector.broadcast %3 : vector<8x1xf32> to vector<8x128xf32>
    %5 = arith.mulf %2, %4 : vector<8x128xf32>
    %c0_5 = arith.constant 0 : index
    %c0_6 = arith.constant 0 : index
    %6 = vector.load %arg3[%c0_5, %c0_6] : memref<8x1xf32, #tpu.memory_space<vmem>>, vector<8x1xf32>
    %7 = vector.broadcast %6 : vector<8x1xf32> to vector<8x128xf32>
    %8 = arith.addf %5, %7 : vector<8x128xf32>
    %cst_7 = arith.constant 0.000000e+00 : f32
    %9 = vector.broadcast %cst_7 : f32 to vector<8x128xf32>
    %10 = arith.cmpf ogt, %8, %9 : vector<8x128xf32>
    %cst_8 = arith.constant 0.000000e+00 : f32
    %11 = vector.broadcast %cst_8 : f32 to vector<8x128xf32>
    %12 = arith.minimumf %8, %11 : vector<8x128xf32>
    %13 = math.exp %12 : vector<8x128xf32>
    %cst_9 = arith.constant 1.000000e+00 : f32
    %14 = vector.broadcast %cst_9 : f32 to vector<8x128xf32>
    %15 = arith.subf %13, %14 : vector<8x128xf32>
    %16 = arith.select %10, %8, %15 : vector<8x128xi1>, vector<8x128xf32>
    %c0_10 = arith.constant 0 : index
    %c0_11 = arith.constant 0 : index
    %17 = vector.load %arg4[%c0_10, %c0_11] : memref<128x48xf32, #tpu.memory_space<vmem>>, vector<128x48xf32>
    %cst_12 = arith.constant dense<0.000000e+00> : vector<8x48xf32>
    %18 = tpu.matmul %16, %17, %cst_12 {dimension_numbers = #tpu.dot_dimension_numbers<[1], [0], [0], [1], [0, 0, 1, 1], [], []>} : vector<8x128xf32>, vector<128x48xf32>, vector<8x48xf32> -> vector<8x48xf32>
    %cst_13 = arith.constant 0.000000e+00 : f32
    %19 = vector.broadcast %cst_13 : f32 to vector<8x32xf32>
    %c0_14 = arith.constant 0 : index
    %c0_15 = arith.constant 0 : index
    %c0_16 = arith.constant 0 : index
    %20 = vector.load %arg5[%c0_14, %c0_15, %c0_16] : memref<16x8x32xf32, #tpu.memory_space<vmem>>, vector<1x8x32xf32>
    %21 = vector.shape_cast %20 : vector<1x8x32xf32> to vector<8x32xf32>
    %22 = vector.extract_strided_slice %18 {offsets = [0, 0], sizes = [8, 32], strides = [1, 1]} : vector<8x48xf32> to vector<8x32xf32>
    %23 = arith.mulf %21, %22 : vector<8x32xf32>
    %24 = arith.addf %19, %23 : vector<8x32xf32>
    %c1 = arith.constant 1 : index
    %c0_17 = arith.constant 0 : index
    %c0_18 = arith.constant 0 : index
    %25 = vector.load %arg5[%c1, %c0_17, %c0_18] : memref<16x8x32xf32, #tpu.memory_space<vmem>>, vector<1x8x32xf32>
    %26 = vector.shape_cast %25 : vector<1x8x32xf32> to vector<8x32xf32>
    %27 = vector.extract_strided_slice %18 {offsets = [0, 1], sizes = [8, 32], strides = [1, 1]} : vector<8x48xf32> to vector<8x32xf32>
    %28 = arith.mulf %26, %27 : vector<8x32xf32>
    %29 = arith.addf %24, %28 : vector<8x32xf32>
    %c2 = arith.constant 2 : index
    %c0_19 = arith.constant 0 : index
    %c0_20 = arith.constant 0 : index
    %30 = vector.load %arg5[%c2, %c0_19, %c0_20] : memref<16x8x32xf32, #tpu.memory_space<vmem>>, vector<1x8x32xf32>
    %31 = vector.shape_cast %30 : vector<1x8x32xf32> to vector<8x32xf32>
    %32 = vector.extract_strided_slice %18 {offsets = [0, 2], sizes = [8, 32], strides = [1, 1]} : vector<8x48xf32> to vector<8x32xf32>
    %33 = arith.mulf %31, %32 : vector<8x32xf32>
    %34 = arith.addf %29, %33 : vector<8x32xf32>
    %c3 = arith.constant 3 : index
    %c0_21 = arith.constant 0 : index
    %c0_22 = arith.constant 0 : index
    %35 = vector.load %arg5[%c3, %c0_21, %c0_22] : memref<16x8x32xf32, #tpu.memory_space<vmem>>, vector<1x8x32xf32>
    %36 = vector.shape_cast %35 : vector<1x8x32xf32> to vector<8x32xf32>
    %37 = vector.extract_strided_slice %18 {offsets = [0, 3], sizes = [8, 32], strides = [1, 1]} : vector<8x48xf32> to vector<8x32xf32>
    %38 = arith.mulf %36, %37 : vector<8x32xf32>
    %39 = arith.addf %34, %38 : vector<8x32xf32>
    %c4 = arith.constant 4 : index
    %c0_23 = arith.constant 0 : index
    %c0_24 = arith.constant 0 : index
    %40 = vector.load %arg5[%c4, %c0_23, %c0_24] : memref<16x8x32xf32, #tpu.memory_space<vmem>>, vector<1x8x32xf32>
    %41 = vector.shape_cast %40 : vector<1x8x32xf32> to vector<8x32xf32>
    %42 = vector.extract_strided_slice %18 {offsets = [0, 4], sizes = [8, 32], strides = [1, 1]} : vector<8x48xf32> to vector<8x32xf32>
    %43 = arith.mulf %41, %42 : vector<8x32xf32>
    %44 = arith.addf %39, %43 : vector<8x32xf32>
    %c5 = arith.constant 5 : index
    %c0_25 = arith.constant 0 : index
    %c0_26 = arith.constant 0 : index
    %45 = vector.load %arg5[%c5, %c0_25, %c0_26] : memref<16x8x32xf32, #tpu.memory_space<vmem>>, vector<1x8x32xf32>
    %46 = vector.shape_cast %45 : vector<1x8x32xf32> to vector<8x32xf32>
    %47 = vector.extract_strided_slice %18 {offsets = [0, 5], sizes = [8, 32], strides = [1, 1]} : vector<8x48xf32> to vector<8x32xf32>
    %48 = arith.mulf %46, %47 : vector<8x32xf32>
    %49 = arith.addf %44, %48 : vector<8x32xf32>
    %c6 = arith.constant 6 : index
    %c0_27 = arith.constant 0 : index
    %c0_28 = arith.constant 0 : index
    %50 = vector.load %arg5[%c6, %c0_27, %c0_28] : memref<16x8x32xf32, #tpu.memory_space<vmem>>, vector<1x8x32xf32>
    %51 = vector.shape_cast %50 : vector<1x8x32xf32> to vector<8x32xf32>
    %52 = vector.extract_strided_slice %18 {offsets = [0, 6], sizes = [8, 32], strides = [1, 1]} : vector<8x48xf32> to vector<8x32xf32>
    %53 = arith.mulf %51, %52 : vector<8x32xf32>
    %54 = arith.addf %49, %53 : vector<8x32xf32>
    %c7 = arith.constant 7 : index
    %c0_29 = arith.constant 0 : index
    %c0_30 = arith.constant 0 : index
    %55 = vector.load %arg5[%c7, %c0_29, %c0_30] : memref<16x8x32xf32, #tpu.memory_space<vmem>>, vector<1x8x32xf32>
    %56 = vector.shape_cast %55 : vector<1x8x32xf32> to vector<8x32xf32>
    %57 = vector.extract_strided_slice %18 {offsets = [0, 7], sizes = [8, 32], strides = [1, 1]} : vector<8x48xf32> to vector<8x32xf32>
    %58 = arith.mulf %56, %57 : vector<8x32xf32>
    %59 = arith.addf %54, %58 : vector<8x32xf32>
    %c8 = arith.constant 8 : index
    %c0_31 = arith.constant 0 : index
    %c0_32 = arith.constant 0 : index
    %60 = vector.load %arg5[%c8, %c0_31, %c0_32] : memref<16x8x32xf32, #tpu.memory_space<vmem>>, vector<1x8x32xf32>
    %61 = vector.shape_cast %60 : vector<1x8x32xf32> to vector<8x32xf32>
    %62 = vector.extract_strided_slice %18 {offsets = [0, 8], sizes = [8, 32], strides = [1, 1]} : vector<8x48xf32> to vector<8x32xf32>
    %63 = arith.mulf %61, %62 : vector<8x32xf32>
    %64 = arith.addf %59, %63 : vector<8x32xf32>
    %c9 = arith.constant 9 : index
    %c0_33 = arith.constant 0 : index
    %c0_34 = arith.constant 0 : index
    %65 = vector.load %arg5[%c9, %c0_33, %c0_34] : memref<16x8x32xf32, #tpu.memory_space<vmem>>, vector<1x8x32xf32>
    %66 = vector.shape_cast %65 : vector<1x8x32xf32> to vector<8x32xf32>
    %67 = vector.extract_strided_slice %18 {offsets = [0, 9], sizes = [8, 32], strides = [1, 1]} : vector<8x48xf32> to vector<8x32xf32>
    %68 = arith.mulf %66, %67 : vector<8x32xf32>
    %69 = arith.addf %64, %68 : vector<8x32xf32>
    %c10 = arith.constant 10 : index
    %c0_35 = arith.constant 0 : index
    %c0_36 = arith.constant 0 : index
    %70 = vector.load %arg5[%c10, %c0_35, %c0_36] : memref<16x8x32xf32, #tpu.memory_space<vmem>>, vector<1x8x32xf32>
    %71 = vector.shape_cast %70 : vector<1x8x32xf32> to vector<8x32xf32>
    %72 = vector.extract_strided_slice %18 {offsets = [0, 10], sizes = [8, 32], strides = [1, 1]} : vector<8x48xf32> to vector<8x32xf32>
    %73 = arith.mulf %71, %72 : vector<8x32xf32>
    %74 = arith.addf %69, %73 : vector<8x32xf32>
    %c11 = arith.constant 11 : index
    %c0_37 = arith.constant 0 : index
    %c0_38 = arith.constant 0 : index
    %75 = vector.load %arg5[%c11, %c0_37, %c0_38] : memref<16x8x32xf32, #tpu.memory_space<vmem>>, vector<1x8x32xf32>
    %76 = vector.shape_cast %75 : vector<1x8x32xf32> to vector<8x32xf32>
    %77 = vector.extract_strided_slice %18 {offsets = [0, 11], sizes = [8, 32], strides = [1, 1]} : vector<8x48xf32> to vector<8x32xf32>
    %78 = arith.mulf %76, %77 : vector<8x32xf32>
    %79 = arith.addf %74, %78 : vector<8x32xf32>
    %c12 = arith.constant 12 : index
    %c0_39 = arith.constant 0 : index
    %c0_40 = arith.constant 0 : index
    %80 = vector.load %arg5[%c12, %c0_39, %c0_40] : memref<16x8x32xf32, #tpu.memory_space<vmem>>, vector<1x8x32xf32>
    %81 = vector.shape_cast %80 : vector<1x8x32xf32> to vector<8x32xf32>
    %82 = vector.extract_strided_slice %18 {offsets = [0, 12], sizes = [8, 32], strides = [1, 1]} : vector<8x48xf32> to vector<8x32xf32>
    %83 = arith.mulf %81, %82 : vector<8x32xf32>
    %84 = arith.addf %79, %83 : vector<8x32xf32>
    %c13 = arith.constant 13 : index
    %c0_41 = arith.constant 0 : index
    %c0_42 = arith.constant 0 : index
    %85 = vector.load %arg5[%c13, %c0_41, %c0_42] : memref<16x8x32xf32, #tpu.memory_space<vmem>>, vector<1x8x32xf32>
    %86 = vector.shape_cast %85 : vector<1x8x32xf32> to vector<8x32xf32>
    %87 = vector.extract_strided_slice %18 {offsets = [0, 13], sizes = [8, 32], strides = [1, 1]} : vector<8x48xf32> to vector<8x32xf32>
    %88 = arith.mulf %86, %87 : vector<8x32xf32>
    %89 = arith.addf %84, %88 : vector<8x32xf32>
    %c14 = arith.constant 14 : index
    %c0_43 = arith.constant 0 : index
    %c0_44 = arith.constant 0 : index
    %90 = vector.load %arg5[%c14, %c0_43, %c0_44] : memref<16x8x32xf32, #tpu.memory_space<vmem>>, vector<1x8x32xf32>
    %91 = vector.shape_cast %90 : vector<1x8x32xf32> to vector<8x32xf32>
    %92 = vector.extract_strided_slice %18 {offsets = [0, 14], sizes = [8, 32], strides = [1, 1]} : vector<8x48xf32> to vector<8x32xf32>
    %93 = arith.mulf %91, %92 : vector<8x32xf32>
    %94 = arith.addf %89, %93 : vector<8x32xf32>
    %c15 = arith.constant 15 : index
    %c0_45 = arith.constant 0 : index
    %c0_46 = arith.constant 0 : index
    %95 = vector.load %arg5[%c15, %c0_45, %c0_46] : memref<16x8x32xf32, #tpu.memory_space<vmem>>, vector<1x8x32xf32>
    %96 = vector.shape_cast %95 : vector<1x8x32xf32> to vector<8x32xf32>
    %97 = vector.extract_strided_slice %18 {offsets = [0, 15], sizes = [8, 32], strides = [1, 1]} : vector<8x48xf32> to vector<8x32xf32>
    %98 = arith.mulf %96, %97 : vector<8x32xf32>
    %99 = arith.addf %94, %98 : vector<8x32xf32>
    %c0_47 = arith.constant 0 : index
    %c0_48 = arith.constant 0 : index
    %100 = vector.load %arg6[%c0_47, %c0_48] : memref<8x8xf32, #tpu.memory_space<vmem>>, vector<8x8xf32>
    %cst_49 = arith.constant dense<0.000000e+00> : vector<8x32xf32>
    %101 = tpu.matmul %100, %99, %cst_49 {dimension_numbers = #tpu.dot_dimension_numbers<[1], [0], [0], [1], [0, 0, 1, 1], [], []>} : vector<8x8xf32>, vector<8x32xf32>, vector<8x32xf32> -> vector<8x32xf32>
    %c0_50 = arith.constant 0 : index
    %c0_51 = arith.constant 0 : index
    %102 = vector.load %arg7[%c0_50, %c0_51] : memref<8x1xf32, #tpu.memory_space<vmem>>, vector<8x1xf32>
    %103 = vector.broadcast %102 : vector<8x1xf32> to vector<8x32xf32>
    %104 = arith.addf %101, %103 : vector<8x32xf32>
    %cst_52 = arith.constant 0.000000e+00 : f32
    %105 = vector.broadcast %cst_52 : f32 to vector<8x32xf32>
    %106 = arith.cmpf ogt, %104, %105 : vector<8x32xf32>
    %cst_53 = arith.constant 0.000000e+00 : f32
    %107 = vector.broadcast %cst_53 : f32 to vector<8x32xf32>
    %108 = arith.minimumf %104, %107 : vector<8x32xf32>
    %109 = math.exp %108 : vector<8x32xf32>
    %cst_54 = arith.constant 1.000000e+00 : f32
    %110 = vector.broadcast %cst_54 : f32 to vector<8x32xf32>
    %111 = arith.subf %109, %110 : vector<8x32xf32>
    %112 = arith.select %106, %104, %111 : vector<8x32xi1>, vector<8x32xf32>
    %c0_55 = arith.constant 0 : index
    %c0_56 = arith.constant 0 : index
    %113 = vector.load %arg8[%c0_55, %c0_56] : memref<8x32xf32, #tpu.memory_space<vmem>>, vector<8x32xf32>
    %114 = arith.mulf %112, %113 : vector<8x32xf32>
    %c0_57 = arith.constant 0 : index
    %c0_58 = arith.constant 0 : index
    %115 = vector.load %arg10[%c0_57, %c0_58] : memref<32x2xf32, #tpu.memory_space<vmem>>, vector<32x2xf32>
    %cst_59 = arith.constant dense<0.000000e+00> : vector<8x2xf32>
    %116 = tpu.matmul %114, %115, %cst_59 {dimension_numbers = #tpu.dot_dimension_numbers<[1], [0], [0], [1], [0, 0, 1, 1], [], []>} : vector<8x32xf32>, vector<32x2xf32>, vector<8x2xf32> -> vector<8x2xf32>
    %c0_60 = arith.constant 0 : index
    %c0_61 = arith.constant 0 : index
    %117 = vector.load %arg9[%c0_60, %c0_61] : memref<8x32xf32, #tpu.memory_space<vmem>>, vector<8x32xf32>
    %118 = arith.mulf %112, %117 : vector<8x32xf32>
    %c0_62 = arith.constant 0 : index
    %c0_63 = arith.constant 0 : index
    %119 = vector.load %arg10[%c0_62, %c0_63] : memref<32x2xf32, #tpu.memory_space<vmem>>, vector<32x2xf32>
    %cst_64 = arith.constant dense<0.000000e+00> : vector<8x2xf32>
    %120 = tpu.matmul %118, %119, %cst_64 {dimension_numbers = #tpu.dot_dimension_numbers<[1], [0], [0], [1], [0, 0, 1, 1], [], []>} : vector<8x32xf32>, vector<32x2xf32>, vector<8x2xf32> -> vector<8x2xf32>
    %cst_65 = arith.constant dense<0.000000e+00> : vector<2xf32>
    %121 = vector.multi_reduction <add>, %116, %cst_65 [0] : vector<8x2xf32> to vector<2xf32>
    %122 = vector.shape_cast %121 : vector<2xf32> to vector<1x2xf32>
    %c0_66 = arith.constant 0 : index
    %c0_67 = arith.constant 0 : index
    %123 = vector.load %arg11[%c0_66, %c0_67] : memref<2x2xf32, #tpu.memory_space<vmem>>, vector<1x2xf32>
    %124 = arith.addf %122, %123 : vector<1x2xf32>
    %c0_68 = arith.constant 0 : index
    %c0_69 = arith.constant 0 : index
    %125 = vector.load %arg12[%c0_68, %c0_69] : memref<2x2xf32, #tpu.memory_space<vmem>>, vector<1x2xf32>
    tpu.vector_store %arg12[%c0_68, %c0_69], %124 {strides = array<i32>} : memref<2x2xf32, #tpu.memory_space<vmem>>, vector<1x2xf32>,
    %cst_70 = arith.constant dense<0.000000e+00> : vector<2xf32>
    %126 = vector.multi_reduction <add>, %120, %cst_70 [0] : vector<8x2xf32> to vector<2xf32>
    %127 = vector.shape_cast %126 : vector<2xf32> to vector<1x2xf32>
    %c1_71 = arith.constant 1 : index
    %c0_72 = arith.constant 0 : index
    %128 = vector.load %arg11[%c1_71, %c0_72] : memref<2x2xf32, #tpu.memory_space<vmem>>, vector<1x2xf32>
    %129 = arith.addf %127, %128 : vector<1x2xf32>
    %c1_73 = arith.constant 1 : index
    %c0_74 = arith.constant 0 : index
    %130 = vector.load %arg12[%c1_73, %c0_74] : memref<2x2xf32, #tpu.memory_space<vmem>>, vector<1x2xf32>
    tpu.vector_store %arg12[%c1_73, %c0_74], %129 {strides = array<i32>} : memref<2x2xf32, #tpu.memory_space<vmem>>, vector<1x2xf32>,
    return
  }
}

</mosaic_0001>

<bundles_post_ra>
// kernel: tpu_custom_call.1
= control target key start
LH: loop header
LB: loop body
LE: loop exit
PB: predicated region body
PF: predicated region fallthrough
CT: control target
= control target key end

     0   :  { %v856_v3 = vmov 0.0|0.0   ;;  %vm857_vm0 = vmmov 0   ;;  %v858_v6 = vmov 0.0   ;;  %v859_v8 = vmov 0   ;;  %s1139_s0 = inlined_call_operand.vmem [shape: f32[64,128], index: 0, kind: input, shape index: {}]   ;;  %s1140_s1 = inlined_call_operand.vmem [shape: f32[8,64], index: 1, kind: input, shape index: {}]   ;;  %s1141_s2 = inlined_call_operand.vmem [shape: f32[8,1], index: 2, kind: input, shape index: {}]   ;;  %s1142_s3 = inlined_call_operand.vmem [shape: f32[8,1], index: 3, kind: input, shape index: {}]   ;;  %s1143_s4 = inlined_call_operand.vmem [shape: f32[128,48], index: 4, kind: input, shape index: {}]   ;;  %s1144_s5 = inlined_call_operand.vmem [shape: f32[16,8,32], index: 5, kind: input, shape index: {}]   ;;  %s1145_s6 = inlined_call_operand.vmem [shape: f32[8,8], index: 6, kind: input, shape index: {}]   ;;  %s1146_s7 = inlined_call_operand.vmem [shape: f32[8,1], index: 7, kind: input, shape index: {}]   ;;  %s1147_s8 = inlined_call_operand.vmem [shape: f32[8,32], index: 8, kind: input, shape index: {}]   ;;  %s1148_s9 = inlined_call_operand.vmem [shape: f32[8,32], index: 9, kind: input, shape index: {}]   ;;  %s1149_s10 = inlined_call_operand.vmem [shape: f32[32,2], index: 10, kind: input, shape index: {}]   ;;  %s1150_s11 = inlined_call_operand.vmem [shape: f32[2,2], index: 11, kind: input, shape index: {}]   ;;  %s1151_s12 = inlined_call_operand.hbm [shape: f32[2,2], index: 12, kind: output, shape index: {}]  }
   0x1   :  { %v43_v0 = vld [vmem:[%s1139_s0] sm:$0xff]  ;;  %v44_v1 = vld [vmem:[%s1139_s0 + $0x8] sm:$0xff]  ;;  %v45_v2 = vld [vmem:[%s1139_s0 + $0x10] sm:$0xff]  ;;  %758 = vmatprep.subr.bf16.mxu0 %v856_v3  ;;  %693 = vmatprep.mubr.msk.f32.mxu0 %vm857_vm0, %v858_v6 }
   0x2   :  { %v759_v4 = vpack.c.bf16 %v44_v1, %v43_v0  ;;  %v46_v5 = vld [vmem:[%s1139_s0 + $0x18] sm:$0xff]  ;;  %v47_v7 = vld [vmem:[%s1139_s0 + $0x20] sm:$0xff]  ;;  %826 = vset.pattern.permute.xlu0 %v859_v8  ;;  %770 = vmatprep.subr.bf16.mxu1 %v856_v3  ;;  %v48_v10 = vld [vmem:[%s1139_s0 + $0x28] sm:$0xff] }
   0x3   :  { %v762_v9 = vpack.c.bf16 %v46_v5, %v45_v2  ;;  %v125_v11 = vld [vmem:[%s1141_s2] sm:$0xff]  ;;  %728 = vmatprep.mubr.msk.f32.mxu1 %vm857_vm0, %v858_v6  ;;  %v146_v13 = vld [vmem:[%s1143_s4 + $0x8] sm:$0xff]  ;;  %v147_v14 = vld [vmem:[%s1143_s4 + $0x10] sm:$0xff]  ;;  %827 = vset.pattern.permute.xlu1 %v859_v8 }
   0x4   :  { %760 = vmatpush3.bf16.msra.mxu0 %v759_v4  ;;  %v145_v12 = vld [vmem:[%s1143_s4] sm:$0xff]  ;;  %128 = vperm.xlu0 %826, %v125_v11   ;;  %v148_v15 = vld [vmem:[%s1143_s4 + $0x18] sm:$0xff] }
   0x5   :  { %761 = vmatprep.subr.bf16.mxu0 %v856_v3  ;;  %v132_v16 = vld [vmem:[%s1142_s3] sm:$0xff]  ;;  %v771_v17 = vpack.c.bf16 %v146_v13, %v145_v12 }
   0x6   :  { %17 = vsyncpa [#allocation3], 0  ;;  %v765_v18 = vpack.c.bf16 %v48_v10, %v47_v7  ;;  %v774_v19 = vpack.c.bf16 %v148_v15, %v147_v14  ;;  %v49_v20 = vld [vmem:[%s1139_s0 + $0x30] sm:$0xff]  ;;  %v50_v21 = vld [vmem:[%s1139_s0 + $0x38] sm:$0xff]  ;;  %vm51_vm1 = vcmask 523264   ;;  %s861_s14 = smov 127  }
   0x7   :  { %772 = vmatpush3.bf16.msra.mxu1 %v771_v17  ;;  %v768_v22 = vpack.c.bf16 %v50_v21, %v49_v20  ;;  %v42_v23 = vld [vmem:[%s1140_s1] sm:$0xff]  ;;  %v150_v25 = vld [vmem:[%s1143_s4 + $0x28] sm:$0xff]  ;;  %v151_v27 = vld [vmem:[%s1143_s4 + $0x30] sm:$0xff]  ;;  %s862_s15 = smov 123   ;;  %s863_s1 = smov 126   ;;  %vm347_vm3 = vcmask 64512  }
   0x8   :  { %763 = vmatpush3.bf16.msra.mxu0 %v762_v9  ;;  %135 = vperm.xlu0 %826, %v132_v16   ;;  %v149_v24 = vld [vmem:[%s1143_s4 + $0x20] sm:$0xff]  ;;  %v152_v28 = vld [vmem:[%s1143_s4 + $0x38] sm:$0xff]  ;;  %v154_v31 = vld [vmem:[%s1143_s4 + $0x48] sm:$0xff]  ;;  %s864_s16 = smov 121   ;;  %s865_s17 = smov 124   ;;  %vm433_vm5 = vcmask 261120  }
   0x9   :  { %764 = vmatprep.subr.bf16.mxu0 %v856_v3  ;;  %773 = vmatprep.subr.bf16.mxu1 %v856_v3  ;;  %v777_v26 = vpack.c.bf16 %v150_v25, %v149_v24  ;;  %v780_v29 = vpack.c.bf16 %v152_v28, %v151_v27  ;;  %v153_v30 = vld [vmem:[%s1143_s4 + $0x40] sm:$0xff]  ;;  %v155_v33 = vld [vmem:[%s1143_s4 + $0x50] sm:$0xff]  ;;  %v156_v34 = vld [vmem:[%s1143_s4 + $0x58] sm:$0xff]  ;;  %s866_s18 = smov 119   ;;  %s867_s19 = smov 122   ;;  %vm582_vm6 = vcmask 15360  }
   0xa   :  { %v783_v32 = vpack.c.bf16 %v154_v31, %v153_v30  ;;  %v157_v35 = vld [vmem:[%s1143_s4 + $0x60] sm:$0xff]  ;;  %v786_v36 = vpack.c.bf16 %v156_v34, %v155_v33  ;;  %v158_v37 = vld [vmem:[%s1143_s4 + $0x68] sm:$0xff]  ;;  %v159_v39 = vld [vmem:[%s1143_s4 + $0x70] sm:$0xff]  ;;  %s868_s20 = smov 117   ;;  %s869_s21 = smov 120   ;;  %vm592_vm7 = vcmask 8192  }
   0xb   :  { %775 = vmatpush3.bf16.msra.mxu1 %v774_v19  ;;  %v789_v38 = vpack.c.bf16 %v158_v37, %v157_v35  ;;  %v160_v40 = vld [vmem:[%s1143_s4 + $0x78] sm:$0xff]  ;;  %s860_s4 = smov 125   ;;  %s870_s22 = smov 115   ;;  %v341_v55 = vld [vmem:[%s1146_s7] sm:$0xff]  ;;  %v620_v56 = vld [vmem:[%s1144_s5 + $0x8] sm:$0xff] }
   0xc   :  { %766 = vmatpush3.bf16.msra.mxu0 %v765_v18  ;;  %776 = vmatprep.subr.bf16.mxu1 %v856_v3  ;;  %v792_v41 = vpack.c.bf16 %v160_v40, %v159_v39  ;;  %s871_s23 = smov 118   ;;  %s872_s2 = smov 113   ;;  %v231_v58 = vld [vmem:[%s1144_s5] sm:$0xff]  ;;  %v621_v61 = vld [vmem:[%s1144_s5 + $0x10] sm:$0xff]  ;;  %v622_v63 = vld [vmem:[%s1144_s5 + $0x18] sm:$0xff] }
   0xd   :  { %767 = vmatprep.subr.bf16.mxu0 %v856_v3  ;;  %s873_s24 = smov 116   ;;  %s874_s25 = smov 114   ;;  %v623_v5 = vld [vmem:[%s1144_s5 + $0x20] sm:$0xff]  ;;  %v624_v9 = vld [vmem:[%s1144_s5 + $0x28] sm:$0xff]  ;;  %v625_v14 = vld [vmem:[%s1144_s5 + $0x30] sm:$0xff] }
   0xe   :  { %v626_v17 = vld [vmem:[%s1144_s5 + $0x38] sm:$0xff]  ;;  %v628_v25 = vld [vmem:[%s1144_s5 + $0x48] sm:$0xff]  ;;  %v629_v30 = vld [vmem:[%s1144_s5 + $0x50] sm:$0xff] }
   0xf   :  { %778 = vmatpush3.bf16.msra.mxu1 %v777_v26  ;;  %v630_v33 = vld [vmem:[%s1144_s5 + $0x58] sm:$0xff] }
  0x10   :  { %769 = vmatpush3.bf16.msra.mxu0 %v768_v22  ;;  %779 = vmatprep.subr.bf16.mxu1 %v856_v3  ;;  %v627_v22 = vld [vmem:[%s1144_s5 + $0x40] sm:$0xff] }
  0x11   :  { %731 = vmatprep.subr.mxu0 %v858_v6 }
  0x13   :  { %694 = vmatmul.mubr.msk.f32.vlgmr.msra.gmra.mrb[0].mxu0 %vm51_vm1, %v42_v23  ;;  %781 = vmatpush3.bf16.msra.mxu1 %v780_v29 }
  0x14   :  { %733 = vmatprep.mubr.msk.f32.mxu0 %vm857_vm0, %v858_v6  ;;  %782 = vmatprep.subr.bf16.mxu1 %v856_v3 }
  0x17   :  { %784 = vmatpush3.bf16.msra.mxu1 %v783_v32 }
  0x18   :  { %785 = vmatprep.subr.bf16.mxu1 %v856_v3 }
  0x1b   :  { %787 = vmatpush3.bf16.msra.mxu1 %v786_v36 }
  0x1c   :  { %788 = vmatprep.subr.bf16.mxu1 %v856_v3 }
  0x1f   :  { %790 = vmatpush3.bf16.msra.mxu1 %v789_v38  ;;  %v631_v38 = vld [vmem:[%s1144_s5 + $0x60] sm:$0xff] }
  0x20   :  { %791 = vmatprep.subr.bf16.mxu1 %v856_v3 }
  0x23   :  { %793 = vmatpush3.bf16.msra.mxu1 %v792_v41  ;;  %v632_v41 = vld [vmem:[%s1144_s5 + $0x68] sm:$0xff] }
  0x83   :  { %v129_v42 = vpop.permute.xlu0 %128 }
  0x87   :  { %v136_v46 = vpop.permute.xlu0 %135 }
  0xe6   :  { %v121_v43 = vpop.f32.mrb[0].mxu0 }
  0xe7   :  { %v131_v44 = vmul.f32 %v129_v42, %v121_v43  ;;  %v695_v45 = vpop.f32.mrb[1].mxu0 }
  0xe8   :  { %v633_v45 = vld [vmem:[%s1144_s5 + $0x70] sm:$0xff] }
  0xe9   :  { %v138_v47 = vadd.f32 %v136_v46, %v131_v44 }
  0xeb   :  { %v140_v48 = vmin.f32 %v138_v47, 0.0  ;;  %vm139_vm2 = vcmp.gt.f32.partialorder %v138_v47, 0.0 }
  0xed   :  { %v141_v49 = vmul.f32 1.442695, %v140_v48  ;;  %v634_v48 = vld [vmem:[%s1144_s5 + $0x78] sm:$0xff] }
  0xef   :  { %828 = vpow2.f32 %v141_v49 }
  0xf9   :  { %v829_v50 = vpop.eup %828 }
  0xfa   :  { %v619_v51 = vadd.f32 -1.0, %v829_v50 }
  0xfc   :  { %v144_v52 = vsel %vm139_vm2, %v138_v47, %v619_v51 }
  0xfd   :  { %729 = vmatmul.mubr.f32.vlgmr.msra.gmra.mrb[0].mxu1 %v144_v52 }
 0x1d0   :  { %v227_v53 = vpop.f32.mrb[0].mxu1 }
 0x1d1   :  { %251 = vrot.lane.b32.xlu0 %v227_v53, %s860_s4  ;;  %237 = vrot.lane.b32.xlu1 %v227_v53, %s861_s14  ;;  %v730_v54 = vpop.f32.mrb[1].mxu1  ;;  %v232_v62 = vmul.f32 %v231_v58, %v227_v53  ;;  %v430_v58 = vld [vmem:[%s1149_s10 + $0x8] sm:$0xff] }
 0x1d5   :  { %265 = vrot.lane.b32.xlu0 %v227_v53, %s862_s15  ;;  %244 = vrot.lane.b32.xlu1 %v227_v53, %s863_s1 }
 0x1d9   :  { %279 = vrot.lane.b32.xlu0 %v227_v53, %s864_s16  ;;  %258 = vrot.lane.b32.xlu1 %v227_v53, %s865_s17 }
 0x1dd   :  { %293 = vrot.lane.b32.xlu0 %v227_v53, %s866_s18  ;;  %272 = vrot.lane.b32.xlu1 %v227_v53, %s867_s19 }
 0x1e1   :  { %307 = vrot.lane.b32.xlu0 %v227_v53, %s868_s20  ;;  %286 = vrot.lane.b32.xlu1 %v227_v53, %s869_s21 }
 0x1e5   :  { %321 = vrot.lane.b32.xlu0 %v227_v53, %s870_s22  ;;  %300 = vrot.lane.b32.xlu1 %v227_v53, %s871_s23 }
 0x1e9   :  { %335 = vrot.lane.b32.xlu0 %v227_v53, %s872_s2  ;;  %314 = vrot.lane.b32.xlu1 %v227_v53, %s873_s24 }
 0x1ed   :  { %328 = vrot.lane.b32.xlu1 %v227_v53, %s874_s25  ;;  %s875_s25 = smov [#allocation2]  }
 0x1ee   :  { %s610_s26 = sshll.u32 %s875_s25, 4  ;;  %s611_s26 = int_to_ptr.vmem [resolvable:$true] %s610_s26 }
 0x1ef   :  { %s832_s27 = scalar_lea.vmem %s611_s26, 32  ;;  %p837_p1 = scmp.lt.s32.totalorder %s611_s26, %s611_s26 }
 0x1f0   :  { %p833_p0 = scmp.ne.s32.totalorder %s611_s26, %s832_s27  ;;  %p838_p2 = scmp.lt.s32.totalorder %s832_s27, %s832_s27 }
 0x1f1   :  { %344 = vperm.xlu1 %827, %v341_v55  }
 0x1f2   :  { %p839_p3 = por %p838_p2, %p837_p1 }
 0x1f4   :  { %p840_p4 = pnand %p839_p3, %p833_p0 }
 0x243   :  { %v252_v57 = vpop.permute.xlu0 %251  ;;  %v238_v59 = vpop.permute.xlu1 %237 }
 0x244   :  { %v240_v60 = vmul.f32 %v620_v56, %v238_v59  ;;  %v254_v7 = vmul.f32 %v622_v63, %v252_v57  ;;  %v340_v56 = vld [vmem:[%s1145_s6] sm:$0xff] }
 0x245   :  { %v429_v57 = vld [vmem:[%s1149_s10] sm:$0xff] }
 0x246   :  { %v241_v2 = vadd.f32 %v240_v60, %v232_v62  ;;  %v795_v59 = vpack.c.bf16 %v430_v58, %v429_v57  ;;  %v431_v60 = vld [vmem:[%s1149_s10 + $0x10] sm:$0xff] }
 0x247   :  { %v266_v0 = vpop.permute.xlu0 %265  ;;  %v245_v1 = vpop.permute.xlu1 %244 }
 0x248   :  { %v247_v4 = vmul.f32 %v621_v61, %v245_v1  ;;  %v268_v15 = vmul.f32 %v624_v9, %v266_v0  ;;  %v432_v61 = vld [vmem:[%s1149_s10 + $0x18] sm:$0xff]  ;;  %v427_v9 = vld [vmem:[%s1147_s8] sm:$0xff] }
 0x249   :  { %v798_v62 = vpack.c.bf16 %v432_v61, %v431_v60 }
 0x24a   :  { %v248_v8 = vadd.f32 %v247_v4, %v241_v2 }
 0x24b   :  { %v280_v10 = vpop.permute.xlu0 %279  ;;  %v259_v11 = vpop.permute.xlu1 %258 }
 0x24c   :  { %v255_v12 = vadd.f32 %v254_v7, %v248_v8  ;;  %v261_v13 = vmul.f32 %v623_v5, %v259_v11  ;;  %v282_v23 = vmul.f32 %v626_v17, %v280_v10 }
 0x24e   :  { %v262_v16 = vadd.f32 %v261_v13, %v255_v12  ;;  %v507_v12 = vld [vmem:[%s1148_s9] sm:$0xff] }
 0x24f   :  { %v294_v18 = vpop.permute.xlu0 %293  ;;  %v273_v19 = vpop.permute.xlu1 %272 }
 0x250   :  { %v269_v20 = vadd.f32 %v268_v15, %v262_v16  ;;  %v275_v21 = vmul.f32 %v625_v14, %v273_v19  ;;  %v296_v31 = vmul.f32 %v628_v25, %v294_v18 }
 0x252   :  { %v276_v24 = vadd.f32 %v275_v21, %v269_v20 }
 0x253   :  { %v308_v26 = vpop.permute.xlu0 %307  ;;  %v287_v27 = vpop.permute.xlu1 %286 }
 0x254   :  { %v283_v28 = vadd.f32 %v282_v23, %v276_v24  ;;  %v289_v29 = vmul.f32 %v627_v22, %v287_v27  ;;  %v310_v39 = vmul.f32 %v630_v33, %v308_v26  ;;  %v590_v24 = vld [vmem:[%s1150_s11] sm:$0x1] }
 0x256   :  { %v290_v32 = vadd.f32 %v289_v29, %v283_v28 }
 0x257   :  { %v301_v34 = vpop.permute.xlu1 %300  ;;  %v322_v37 = vpop.permute.xlu0 %321 }
 0x258   :  { %v297_v35 = vadd.f32 %v296_v31, %v290_v32  ;;  %v303_v36 = vmul.f32 %v629_v30, %v301_v34  ;;  %v324_v46 = vmul.f32 %v632_v41, %v322_v37  ;;  %v601_v31 = vld [vmem:[%s1150_s11 + $0x1] sm:$0x1] }
 0x25a   :  { %v304_v40 = vadd.f32 %v303_v36, %v297_v35 }
 0x25b   :  { %v315_v42 = vpop.permute.xlu1 %314  ;;  %v336_v49 = vpop.permute.xlu0 %335 }
 0x25c   :  { %v311_v43 = vadd.f32 %v310_v39, %v304_v40  ;;  %v317_v44 = vmul.f32 %v631_v38, %v315_v42  ;;  %v338_v53 = vmul.f32 %v634_v48, %v336_v49 }
 0x25e   :  { %v318_v47 = vadd.f32 %v317_v44, %v311_v43 }
 0x25f   :  { %v329_v50 = vpop.permute.xlu1 %328 }
 0x260   :  { %v325_v51 = vadd.f32 %v324_v46, %v318_v47  ;;  %v331_v52 = vmul.f32 %v633_v45, %v329_v50 }
 0x262   :  { %v332_v54 = vadd.f32 %v331_v52, %v325_v51 }
 0x264   :  { %v339_v55 = vadd.f32 %v338_v53, %v332_v54 }
 0x266   :  { %732 = vmatpush3.msra.mxu0 %v339_v55 }
 0x267   :  { %734 = vmatmul.mubr.msk.f32.vlgmr.msra.gmra.mrb[2].mxu0 %vm347_vm3, %v340_v56  ;;  %794 = vmatprep.subr.bf16.mxu0 %v856_v3 }
 0x268   :  { %744 = vmatprep.mubr.msk.f32.mxu0 %vm857_vm0, %v858_v6  ;;  %796 = vmatpush3.bf16.msra.mxu0 %v795_v59 }
 0x269   :  { %797 = vmatprep.subr.bf16.mxu0 %v856_v3 }
 0x26c   :  { %799 = vmatpush3.bf16.msra.mxu0 %v798_v62 }
 0x26d   :  { %800 = vmatprep.subr.bf16.mxu0 %v856_v3 }
 0x270   :  { %v345_v63 = vpop.permute.xlu1 %344 }
 0x33a   :  { %v417_v0 = vpop.f32.mrb[2].mxu0 }
 0x33b   :  { %v418_v1 = vadd.f32 %v417_v0, %v345_v63  ;;  %v735_v2 = vpop.f32.mrb[3].mxu0 }
 0x33d   :  { %v422_v4 = vmin.f32 %v418_v1, 0.0  ;;  %vm421_vm4 = vcmp.gt.f32.partialorder %v418_v1, 0.0 }
 0x33f   :  { %v423_v5 = vmul.f32 1.442695, %v422_v4 }
 0x341   :  { %830 = vpow2.f32 %v423_v5 }
 0x34b   :  { %v831_v7 = vpop.eup %830 }
 0x34c   :  { %v636_v8 = vadd.f32 -1.0, %v831_v7 }
 0x34e   :  { %v426_v10 = vsel %vm421_vm4, %v418_v1, %v636_v8 }
 0x34f   :  { %v428_v11 = vmul.f32 %v427_v9, %v426_v10  ;;  %v508_v13 = vmul.f32 %v507_v12, %v426_v10 }
 0x351   :  { %745 = vmatmul.mubr.msk.f32.vlgmr.msra.gmra.mrb[4].mxu0 %vm433_vm5, %v428_v11 }
 0x352   :  { %802 = vmatpush3.bf16.msra.mxu0 %v795_v59  ;;  %755 = vmatprep.mubr.msk.f32.mxu0 %vm857_vm0, %v858_v6 }
 0x353   :  { %803 = vmatprep.subr.bf16.mxu0 %v856_v3 }
 0x356   :  { %805 = vmatpush3.bf16.msra.mxu0 %v798_v62 }
 0x359   :  { %756 = vmatmul.mubr.msk.f32.vlgmr.msra.gmra.mrb[6].mxu0 %vm433_vm5, %v508_v13 }
 0x424   :  { %v503_v14 = vpop.f32.mrb[4].mxu0 }
 0x425   :  { %v583_v15 = vsel %vm582_vm6, %v503_v14, 0.0  ;;  %v746_v16 = vpop.f32.mrb[5].mxu0 }
 0x426   :  { %v584_v17 = vrot.slane %v583_v15, 4 }
 0x428   :  { %v585_v18 = vadd.f32 %v584_v17, %v583_v15 }
 0x42a   :  { %v586_v19 = vrot.slane %v585_v18, 2 }
 0x42c   :  { %v587_v20 = vadd.f32 %v586_v19, %v585_v18  ;;  %v578_v21 = vpop.f32.mrb[6].mxu0 }
 0x42d   :  { %v594_v22 = vsel %vm582_vm6, %v578_v21, 0.0  ;;  %v757_v6 = vpop.f32.mrb[7].mxu0 }
 0x42e   :  { %v588_v23 = vrot.slane %v587_v20, 1  ;;  %v595_v3 = vrot.slane %v594_v22, 4 }
 0x430   :  { %v589_v25 = vadd.f32 %v588_v23, %v587_v20  ;;  %v596_v26 = vadd.f32 %v595_v3, %v594_v22 }
 0x432   :  { %v597_v27 = vrot.slane %v596_v26, 2  ;;  %v591_v28 = vadd.f32 %v590_v24, %v589_v25 }
 0x434   :  { %v598_v29 = vadd.f32 %v597_v27, %v596_v26  ;;  %593 = vst.msk [vmem:[#allocation2] sm:$0x1] %vm592_vm7, %v591_v28 }
 0x436   :  { %v599_v30 = vrot.slane %v598_v29, 1 }
 0x438   :  { %v600_v32 = vadd.f32 %v599_v30, %v598_v29 }
 0x43a   :  { %v602_v33 = vadd.f32 %v601_v31, %v600_v32 }
 0x43c   :  { %603 = vst.msk [vmem:[#allocation2 + $0x1] sm:$0x1] %vm592_vm7, %v602_v33 }
 0x43d   :  { %843 = shalt.err (!%p840_p4)
}
 0x43e   :  { %s844_s3 = scalar_lea.hbm %s1151_s12, 32 }
 0x43f   :  { %p845_p5 = scmp.ne.s32.totalorder %s1151_s12, %s844_s3  ;;  %p848_p6 = scmp.lt.u32.totalorder %s844_s3, %s1151_s12 }
 0x441   :  { %p850_p7 = pnand %p848_p6, %p845_p5 }
 0x443   :  { %853 = shalt.err (!%p850_p7)
}
 0x444   :  { %613 = dma.vmem_to_hbm [thread:$0]  %s611_s26, 32, %s1151_s12, [#allocation3]  }
 0x445   :  { %854 = dma.done.wait [#allocation3], 32  }
 0x446   :  { %855 = vsyncadd [#allocation3], 4294967264 }
 0x447   :  { %617 = vsyncpa [#allocation3], 1 }

</bundles_post_ra>
